<compile_context>
chip_gen: v7x
topology: tpu7x:2x2x1
jax: 0.10.0
libtpu: 0.0.40
codegen_flags: <defaults>
</compile_context>

<pallas_src>
import math

import jax
import jax.numpy as jnp
from jax import lax
from jax.experimental import pallas as pl
from jax.experimental.pallas import tpu as pltpu


# ----------------------------- model config (small, synthetic) ----------------
VOCAB = 64          # vocab size; EOT id = VOCAB - 1 (so argmax finds it, like CLIP)
CTX_LEN = 8         # context length  (seq)
WIDTH = 32          # transformer width (hidden)
HEADS = 4           # attention heads
HEAD_DIM = WIDTH // HEADS
LAYERS = 2          # transformer depth
EMBED_DIM = 16      # text projection output dim
LN_EPS = 1e-5
NEG_INF = -1e9

CUSTOM_TEMPLATE = "a photo of a {}, a type of histopathology."   # 'Nuclei' template


def _ln(v, w, b):
    """LayerNorm over the last dim; w/b broadcast as (1, D)."""
    mu = jnp.mean(v, axis=-1, keepdims=True)
    var = jnp.mean((v - mu) * (v - mu), axis=-1, keepdims=True)
    return (v - mu) * lax.rsqrt(var + LN_EPS) * w + b


# ----------------------------- fused encoder kernel ---------------------------
def encoder_kernel(eot_ref, x_ref, wqkv_ref, wo_ref, wfc_ref, wpr_ref,
                   vec_ref, lnf_ref, proj_ref, o_ref, x_sc):
    """One grid point = (sequence n, layer l).

    eot_ref  : (N,) int32 in SMEM    EOT token position per prompt (scalar prefetch)
    x_ref    : (1, L, D)             token+positional embeddings for sequence n
    wqkv_ref : (1, D, 3D)            fused QKV projection weight, layer l
    wo_ref   : (1, D, D)             attention output projection, layer l
    wfc_ref  : (1, D, 4D)            MLP up, layer l
    wpr_ref  : (1, 4D, D)            MLP down, layer l
    vec_ref  : (1, 8, 4D)            packed lane-dense LN scales/biases + all biases
    lnf_ref  : (2, D)                final LN weight / bias         (resident)
    proj_ref : (D, E)                text projection                (resident)
    o_ref    : (1, 1, E)             text features for sequence n
    x_sc     : (L, D) VMEM scratch   residual stream carried across the layer axis
    """
    n = pl.program_id(0)
    l = pl.program_id(1)
    L, D = x_sc.shape
    H, hd = HEADS, HEAD_DIM
    scale = 1.0 / math.sqrt(hd)

    # -- init residual stream from the (token + positional) embeddings at layer 0 --
    @pl.when(l == 0)
    def _init():
        x_sc[...] = x_ref[0]

    # -- unpack the lane-dense parameter slab for this layer --
    vec = vec_ref[0]                                  # (8, 4D)
    ln1_w, ln1_b = vec[0:1, :D], vec[1:2, :D]
    b_o = vec[2:3, :D]
    ln2_w, ln2_b = vec[3:4, :D], vec[4:5, :D]
    b_fc = vec[5:6, :]
    b_pr = vec[6:7, :D]
    b_qkv = vec[7:8, :3 * D]

    # per-sequence causal mask (L x L) — cheap, built per grid point
    ii = lax.broadcasted_iota(jnp.int32, (L, L), 0)
    jj = lax.broadcasted_iota(jnp.int32, (L, L), 1)
    mask = jnp.where(jj <= ii, 0.0, NEG_INF).astype(jnp.float32)

    x = x_sc[...]                                     # (L, D)

    # -- pre-LN multi-head causal self-attention --
    h1 = _ln(x, ln1_w, ln1_b)
    # single fused, lane-dense QKV matmul (L, D) @ (D, 3D)
    qkv = jnp.dot(h1, wqkv_ref[0], preferred_element_type=jnp.float32) + b_qkv

    # head split via static lane slices; per-head core is only (8,8) score/softmax/PV
    ctx_heads = []
    for h in range(H):
        q_h = qkv[:, h * hd:(h + 1) * hd]
        k_h = qkv[:, D + h * hd:D + (h + 1) * hd]
        v_h = qkv[:, 2 * D + h * hd:2 * D + (h + 1) * hd]
        s = jnp.einsum('qd,kd->qk', q_h, k_h,
                       preferred_element_type=jnp.float32) * scale + mask
        s = s - jnp.max(s, axis=-1, keepdims=True)
        p = jnp.exp(s)
        p = p * pl.reciprocal(jnp.sum(p, axis=-1, keepdims=True), approx=True)
        ctx_heads.append(jnp.dot(p, v_h, preferred_element_type=jnp.float32))
    ctx = jnp.concatenate(ctx_heads, axis=-1)         # heads packed back into lanes: (L, D)

    # single fused output projection (L, D) @ (D, D)
    x = x + jnp.dot(ctx, wo_ref[0], preferred_element_type=jnp.float32) + b_o

    # -- pre-LN MLP with QuickGELU --
    h2 = _ln(x, ln2_w, ln2_b)
    m = jnp.dot(h2, wfc_ref[0], preferred_element_type=jnp.float32) + b_fc
    m = m * jax.nn.sigmoid(1.702 * m)
    x = x + jnp.dot(m, wpr_ref[0], preferred_element_type=jnp.float32) + b_pr

    x_sc[...] = x

    # -- final LN + EOT gather + text projection after the last layer --
    @pl.when(l == pl.num_programs(1) - 1)
    def _finalize():
        lnf = lnf_ref[...]
        e = eot_ref[n]                                # SMEM scalar
        row = x_sc[pl.ds(e, 1), :]                    # (1, D) dynamic EOT row gather
        row = _ln(row, lnf[0:1], lnf[1:2])
        o_ref[0] = jnp.dot(row, proj_ref[...], preferred_element_type=jnp.float32)


def run_encoder(x, eot_idx, pk):
    """x: (N, L, D) f32; eot_idx: (N,) int32; pk: packed stacked weights."""
    N, L, D = x.shape
    E = pk["proj"].shape[1]

    def per_layer(shape):
        nd = len(shape)
        return pl.BlockSpec((1,) + tuple(shape[1:]),
                            lambda n, l, eot: (l,) + (0,) * (nd - 1))

    def resident(shape):
        nd = len(shape)
        return pl.BlockSpec(tuple(shape), lambda n, l, eot: (0,) * nd)

    grid_spec = pltpu.PrefetchScalarGridSpec(
        num_scalar_prefetch=1,                        # eot indices -> SMEM
        grid=(N, LAYERS),
        in_specs=[
            pl.BlockSpec((1, L, D), lambda n, l, eot: (n, 0, 0)),   # x (per sequence)
            per_layer(pk["wqkv"].shape),              # streamed per layer
            per_layer(pk["wo"].shape),
            per_layer(pk["wfc"].shape),
            per_layer(pk["wpr"].shape),
            per_layer(pk["vec"].shape),
            resident(pk["lnf"].shape),
            resident(pk["proj"].shape),
        ],
        out_specs=pl.BlockSpec((1, 1, E), lambda n, l, eot: (n, 0, 0)),
        scratch_shapes=[pltpu.VMEM((L, D), jnp.float32)],
    )

    out = pl.pallas_call(
        encoder_kernel,
        out_shape=jax.ShapeDtypeStruct((N, 1, E), jnp.float32),
        grid_spec=grid_spec,
        compiler_params=pltpu.CompilerParams(
            dimension_semantics=("parallel", "arbitrary")),
    )(eot_idx, x, pk["wqkv"], pk["wo"], pk["wfc"], pk["wpr"],
      pk["vec"], pk["lnf"], pk["proj"])
    return out.reshape(N, E)


# ----------------------------- parameter init (deterministic) -----------------
def init_params(key):
    def nrm(k, shape, scale=0.02):
        return (scale * jax.random.normal(k, shape)).astype(jnp.float32)

    keys = jax.random.split(key, 4 + LAYERS)
    params = {
        "token_embedding": nrm(keys[0], (VOCAB, WIDTH)),
        "positional_embedding": nrm(keys[1], (CTX_LEN, WIDTH), 0.01),
        "ln_final_w": jnp.ones((1, WIDTH), jnp.float32),
        "ln_final_b": jnp.zeros((1, WIDTH), jnp.float32),
        "text_projection": nrm(keys[2], (WIDTH, EMBED_DIM), WIDTH ** -0.5),
        "layers": [],
    }
    for li in range(LAYERS):
        lk = jax.random.split(keys[4 + li], 6)
        params["layers"].append({
            "ln1_w": jnp.ones((1, WIDTH), jnp.float32),
            "ln1_b": jnp.zeros((1, WIDTH), jnp.float32),
            "w_qkv": nrm(lk[0], (WIDTH, 3 * WIDTH), WIDTH ** -0.5),
            "b_qkv": jnp.zeros((1, 3 * WIDTH), jnp.float32),
            "w_o": nrm(lk[1], (WIDTH, WIDTH), WIDTH ** -0.5),
            "b_o": jnp.zeros((1, WIDTH), jnp.float32),
            "ln2_w": jnp.ones((1, WIDTH), jnp.float32),
            "ln2_b": jnp.zeros((1, WIDTH), jnp.float32),
            "w_fc": nrm(lk[2], (WIDTH, 4 * WIDTH), WIDTH ** -0.5),
            "b_fc": jnp.zeros((1, 4 * WIDTH), jnp.float32),
            "w_pr": nrm(lk[3], (4 * WIDTH, WIDTH), (4 * WIDTH) ** -0.5),
            "b_pr": jnp.zeros((1, WIDTH), jnp.float32),
        })
    return params


def pack_params(params):
    """Host-side packing into stacked [LAYERS, ...] lane-dense arrays."""
    D = WIDTH
    vec_l = []
    for lp in params["layers"]:
        vec = jnp.zeros((8, 4 * D), jnp.float32)
        vec = vec.at[0, :D].set(lp["ln1_w"].reshape(D))
        vec = vec.at[1, :D].set(lp["ln1_b"].reshape(D))
        vec = vec.at[2, :D].set(lp["b_o"].reshape(D))
        vec = vec.at[3, :D].set(lp["ln2_w"].reshape(D))
        vec = vec.at[4, :D].set(lp["ln2_b"].reshape(D))
        vec = vec.at[5, :].set(lp["b_fc"].reshape(4 * D))
        vec = vec.at[6, :D].set(lp["b_pr"].reshape(D))
        vec = vec.at[7, :3 * D].set(lp["b_qkv"].reshape(3 * D))
        vec_l.append(vec)

    return {
        "wqkv": jnp.stack([lp["w_qkv"] for lp in params["layers"]]),   # (LAYERS, D, 3D)
        "wo":   jnp.stack([lp["w_o"] for lp in params["layers"]]),     # (LAYERS, D, D)
        "wfc":  jnp.stack([lp["w_fc"] for lp in params["layers"]]),    # (LAYERS, D, 4D)
        "wpr":  jnp.stack([lp["w_pr"] for lp in params["layers"]]),    # (LAYERS, 4D, D)
        "vec":  jnp.stack(vec_l),                                      # (LAYERS, 8, 4D)
        "lnf":  jnp.concatenate([params["ln_final_w"],
                                 params["ln_final_b"]], axis=0),       # (2, D)
        "proj": params["text_projection"],                             # (D, E)
    }


# ----------------------------- "tokenizer" (deterministic stand-in) ------------
def tokenize(prompt):
    """SOT=1, per-char hashed ids in [2, VOCAB-2), EOT=VOCAB-1 (argmax), pad=0."""
    sot, eot = 1, VOCAB - 1
    body = [(ord(c) % (VOCAB - 3)) + 2 for c in prompt][: CTX_LEN - 2]
    toks = [sot] + body + [eot]
    toks = toks + [0] * (CTX_LEN - len(toks))
    return toks[:CTX_LEN]


def encode_text(tokens, params):
    """tokens: (N, L) int32. Returns (N, EMBED_DIM) float32 text features."""
    pk = pack_params(params)
    # glue: embedding lookup + positional embedding -> (N, L, D)
    x = params["token_embedding"][tokens] + params["positional_embedding"][None]
    x = x.astype(jnp.float32)
    # glue: EOT position (argmax of token ids, like CLIP); gather happens in-kernel
    eot_idx = jnp.argmax(tokens, axis=-1).astype(jnp.int32)
    return run_encoder(x, eot_idx, pk)


# ----------------------------- pure-JAX reference (for validation) ------------
def encode_text_reference(tokens, params):
    x = params["token_embedding"][tokens] + params["positional_embedding"][None]
    x = x.astype(jnp.float32)
    N, L, D = x.shape
    hd = D // HEADS
    r = jnp.arange(L)[:, None]
    c = jnp.arange(L)[None, :]
    bias = jnp.where(c <= r, 0.0, NEG_INF).astype(jnp.float32)

    def ln(v, w, b):
        mu = v.mean(-1, keepdims=True)
        var = ((v - mu) ** 2).mean(-1, keepdims=True)
        return (v - mu) * lax.rsqrt(var + LN_EPS) * w + b

    for lp in params["layers"]:
        h = ln(x, lp["ln1_w"][0], lp["ln1_b"][0])
        qkv = h @ lp["w_qkv"] + lp["b_qkv"][0]
        q, k, v = qkv[..., :D], qkv[..., D:2 * D], qkv[..., 2 * D:]
        outs = []
        for hh in range(HEADS):
            sl = slice(hh * hd, (hh + 1) * hd)
            s = jnp.einsum('nqd,nkd->nqk', q[..., sl], k[..., sl]) / math.sqrt(hd) + bias
            p = jax.nn.softmax(s, axis=-1)
            outs.append(jnp.einsum('nqk,nkd->nqd', p, v[..., sl]))
        x = x + jnp.concatenate(outs, -1) @ lp["w_o"] + lp["b_o"][0]
        h2 = ln(x, lp["ln2_w"][0], lp["ln2_b"][0])
        m = h2 @ lp["w_fc"] + lp["b_fc"][0]
        m = m * jax.nn.sigmoid(1.702 * m)
        x = x + m @ lp["w_pr"] + lp["b_pr"][0]
    x = ln(x, params["ln_final_w"][0], params["ln_final_b"][0])
    eot = jnp.argmax(tokens, axis=-1)
    return x[jnp.arange(N), eot] @ params["text_projection"]


if __name__ == "__main__":
    key = jax.random.PRNGKey(0)
    params = init_params(key)

    classnames = ["tumor", "stroma", "lymphocyte"]
    prompts = [CUSTOM_TEMPLATE.format(c.replace("_", " ")) for c in classnames]
    tokens = jnp.asarray([tokenize(p) for p in prompts], dtype=jnp.int32)   # (3, 8)

    feats = encode_text(tokens, params)                # (3, EMBED_DIM)
    jax.block_until_ready(feats)
    assert feats.shape == (len(classnames), EMBED_DIM)
    assert bool(jnp.all(jnp.isfinite(feats)))

    ref = encode_text_reference(tokens, params)
    assert bool(jnp.allclose(feats, ref, rtol=2e-2, atol=2e-2))
    print("KERNEL_OK")
</pallas_src>

<mosaic_0001>
module attributes {stable_mosaic.version = 11 : i64} {
  func.func @encoder_kernel(%arg0: i32, %arg1: i32, %arg2: memref<3xi32, #tpu.memory_space<smem>>, %arg3: memref<1x8x32xf32, #tpu.memory_space<vmem>>, %arg4: memref<1x32x96xf32, #tpu.memory_space<vmem>>, %arg5: memref<1x32x32xf32, #tpu.memory_space<vmem>>, %arg6: memref<1x32x128xf32, #tpu.memory_space<vmem>>, %arg7: memref<1x128x32xf32, #tpu.memory_space<vmem>>, %arg8: memref<1x8x128xf32, #tpu.memory_space<vmem>>, %arg9: memref<2x32xf32, #tpu.memory_space<vmem>>, %arg10: memref<32x16xf32, #tpu.memory_space<vmem>>, %arg11: memref<1x1x16xf32, #tpu.memory_space<vmem>>, %arg12: memref<8x32xf32, #tpu.memory_space<vmem>>) attributes {dimension_semantics = [#tpu.dimension_semantics<parallel>, #tpu.dimension_semantics<arbitrary>], iteration_bounds = array<i64: 3, 2>, scalar_prefetch = 1 : i64, scratch_operands = 1 : i64, tpu.core_type = #tpu.core_type<tc>, window_params = [{transform_indices = @transform_0, window_bounds = array<i64: 1, 8, 32>}, {transform_indices = @transform_1, window_bounds = array<i64: 1, 32, 96>}, {transform_indices = @transform_2, window_bounds = array<i64: 1, 32, 32>}, {transform_indices = @transform_3, window_bounds = array<i64: 1, 32, 128>}, {transform_indices = @transform_4, window_bounds = array<i64: 1, 128, 32>}, {transform_indices = @transform_5, window_bounds = array<i64: 1, 8, 128>}, {pipeline_mode = #tpu.pipeline_mode<synchronous>, transform_indices = @transform_6, window_bounds = array<i64: 2, 32>}, {pipeline_mode = #tpu.pipeline_mode<synchronous>, transform_indices = @transform_7, window_bounds = array<i64: 32, 16>}, {transform_indices = @transform_8, window_bounds = array<i64: 1, 1, 16>}]} {
    %c0_i32 = arith.constant 0 : i32
    %0 = arith.cmpi eq, %arg1, %c0_i32 : i32
    %1 = arith.extui %0 : i1 to i32
    %c0_i32_0 = arith.constant 0 : i32
    %2 = arith.cmpi ne, %1, %c0_i32_0 : i32
    scf.if %2 {
      %c0_57 = arith.constant 0 : index
      %c0_58 = arith.constant 0 : index
      %c0_59 = arith.constant 0 : index
      %175 = vector.load %arg3[%c0_57, %c0_58, %c0_59] : memref<1x8x32xf32, #tpu.memory_space<vmem>>, vector<1x8x32xf32>
      %176 = vector.shape_cast %175 : vector<1x8x32xf32> to vector<8x32xf32>
      %c0_60 = arith.constant 0 : index
      %c0_61 = arith.constant 0 : index
      %177 = vector.load %arg12[%c0_60, %c0_61] : memref<8x32xf32, #tpu.memory_space<vmem>>, vector<8x32xf32>
      tpu.vector_store %arg12[%c0_60, %c0_61], %176 {strides = array<i32>} : memref<8x32xf32, #tpu.memory_space<vmem>>, vector<8x32xf32>,
    } else {
    }
    %c0 = arith.constant 0 : index
    %c0_1 = arith.constant 0 : index
    %c0_2 = arith.constant 0 : index
    %3 = vector.load %arg8[%c0, %c0_1, %c0_2] : memref<1x8x128xf32, #tpu.memory_space<vmem>>, vector<1x8x128xf32>
    %4 = vector.shape_cast %3 : vector<1x8x128xf32> to vector<8x128xf32>
    %5 = vector.extract_strided_slice %4 {offsets = [0, 0], sizes = [1, 32], strides = [1, 1]} : vector<8x128xf32> to vector<1x32xf32>
    %6 = vector.extract_strided_slice %4 {offsets = [1, 0], sizes = [1, 32], strides = [1, 1]} : vector<8x128xf32> to vector<1x32xf32>
    %7 = vector.extract_strided_slice %4 {offsets = [2, 0], sizes = [1, 32], strides = [1, 1]} : vector<8x128xf32> to vector<1x32xf32>
    %8 = vector.extract_strided_slice %4 {offsets = [3, 0], sizes = [1, 32], strides = [1, 1]} : vector<8x128xf32> to vector<1x32xf32>
    %9 = vector.extract_strided_slice %4 {offsets = [4, 0], sizes = [1, 32], strides = [1, 1]} : vector<8x128xf32> to vector<1x32xf32>
    %10 = vector.extract_strided_slice %4 {offsets = [5, 0], sizes = [1, 128], strides = [1, 1]} : vector<8x128xf32> to vector<1x128xf32>
    %11 = vector.extract_strided_slice %4 {offsets = [6, 0], sizes = [1, 32], strides = [1, 1]} : vector<8x128xf32> to vector<1x32xf32>
    %12 = vector.extract_strided_slice %4 {offsets = [7, 0], sizes = [1, 96], strides = [1, 1]} : vector<8x128xf32> to vector<1x96xf32>
    %13 = tpu.iota {dimensions = array<i32: 0>} : vector<8x8xi32>
    %14 = tpu.iota {dimensions = array<i32: 1>} : vector<8x8xi32>
    %15 = arith.cmpi sle, %14, %13 : vector<8x8xi32>
    %cst = arith.constant 0.000000e+00 : f32
    %cst_3 = arith.constant -1.000000e+09 : f32
    %16 = vector.broadcast %cst : f32 to vector<8x8xf32>
    %17 = vector.broadcast %cst_3 : f32 to vector<8x8xf32>
    %18 = arith.select %15, %16, %17 : vector<8x8xi1>, vector<8x8xf32>
    %c0_4 = arith.constant 0 : index
    %c0_5 = arith.constant 0 : index
    %19 = vector.load %arg12[%c0_4, %c0_5] : memref<8x32xf32, #tpu.memory_space<vmem>>, vector<8x32xf32>
    %cst_6 = arith.constant dense<0.000000e+00> : vector<8xf32>
    %20 = vector.multi_reduction <add>, %19, %cst_6 [1] : vector<8x32xf32> to vector<8xf32>
    %21 = vector.shape_cast %20 : vector<8xf32> to vector<8x1xf32>
    %cst_7 = arith.constant 3.200000e+01 : f32
    %22 = vector.broadcast %cst_7 : f32 to vector<8x1xf32>
    %23 = arith.divf %21, %22 : vector<8x1xf32>
    %24 = vector.broadcast %23 : vector<8x1xf32> to vector<8x32xf32>
    %25 = arith.subf %19, %24 : vector<8x32xf32>
    %26 = vector.broadcast %23 : vector<8x1xf32> to vector<8x32xf32>
    %27 = arith.subf %19, %26 : vector<8x32xf32>
    %28 = arith.mulf %25, %27 : vector<8x32xf32>
    %cst_8 = arith.constant dense<0.000000e+00> : vector<8xf32>
    %29 = vector.multi_reduction <add>, %28, %cst_8 [1] : vector<8x32xf32> to vector<8xf32>
    %30 = vector.shape_cast %29 : vector<8xf32> to vector<8x1xf32>
    %cst_9 = arith.constant 3.200000e+01 : f32
    %31 = vector.broadcast %cst_9 : f32 to vector<8x1xf32>
    %32 = arith.divf %30, %31 : vector<8x1xf32>
    %33 = vector.broadcast %23 : vector<8x1xf32> to vector<8x32xf32>
    %34 = arith.subf %19, %33 : vector<8x32xf32>
    %cst_10 = arith.constant 9.99999974E-6 : f32
    %35 = vector.broadcast %cst_10 : f32 to vector<8x1xf32>
    %36 = arith.addf %32, %35 : vector<8x1xf32>
    %37 = math.rsqrt %36 : vector<8x1xf32>
    %38 = vector.broadcast %37 : vector<8x1xf32> to vector<8x32xf32>
    %39 = arith.mulf %34, %38 : vector<8x32xf32>
    %40 = vector.broadcast %5 : vector<1x32xf32> to vector<8x32xf32>
    %41 = arith.mulf %39, %40 : vector<8x32xf32>
    %42 = vector.broadcast %6 : vector<1x32xf32> to vector<8x32xf32>
    %43 = arith.addf %41, %42 : vector<8x32xf32>
    %c0_11 = arith.constant 0 : index
    %c0_12 = arith.constant 0 : index
    %c0_13 = arith.constant 0 : index
    %44 = vector.load %arg4[%c0_11, %c0_12, %c0_13] : memref<1x32x96xf32, #tpu.memory_space<vmem>>, vector<1x32x96xf32>
    %45 = vector.shape_cast %44 : vector<1x32x96xf32> to vector<32x96xf32>
    %cst_14 = arith.constant dense<0.000000e+00> : vector<8x96xf32>
    %46 = tpu.matmul %43, %45, %cst_14 {dimension_numbers = #tpu.dot_dimension_numbers<[1], [0], [0], [1], [0, 0, 1, 1], [], []>} : vector<8x32xf32>, vector<32x96xf32>, vector<8x96xf32> -> vector<8x96xf32>
    %47 = vector.broadcast %12 : vector<1x96xf32> to vector<8x96xf32>
    %48 = arith.addf %46, %47 : vector<8x96xf32>
    %49 = vector.extract_strided_slice %48 {offsets = [0, 0], sizes = [8, 8], strides = [1, 1]} : vector<8x96xf32> to vector<8x8xf32>
    %50 = vector.extract_strided_slice %48 {offsets = [0, 32], sizes = [8, 8], strides = [1, 1]} : vector<8x96xf32> to vector<8x8xf32>
    %51 = vector.extract_strided_slice %48 {offsets = [0, 64], sizes = [8, 8], strides = [1, 1]} : vector<8x96xf32> to vector<8x8xf32>
    "tpu.trace_start"() <{level = 10 : i32, message = "qd,kd->qk"}> : () -> ()
    %cst_15 = arith.constant dense<0.000000e+00> : vector<8x8xf32>
    %52 = tpu.matmul %49, %50, %cst_15 {dimension_numbers = #tpu.dot_dimension_numbers<[1], [1], [0], [0], [0, 0, 1, 0], [], []>} : vector<8x8xf32>, vector<8x8xf32>, vector<8x8xf32> -> vector<8x8xf32>
    "tpu.trace_stop"() : () -> ()
    %cst_16 = arith.constant 0.353553385 : f32
    %53 = vector.broadcast %cst_16 : f32 to vector<8x8xf32>
    %54 = arith.mulf %52, %53 : vector<8x8xf32>
    %55 = arith.addf %54, %18 : vector<8x8xf32>
    %cst_17 = arith.constant dense<0xFF800000> : vector<8xf32>
    %56 = vector.multi_reduction <maximumf>, %55, %cst_17 [1] : vector<8x8xf32> to vector<8xf32>
    %57 = vector.shape_cast %56 : vector<8xf32> to vector<8x1xf32>
    %58 = vector.broadcast %57 : vector<8x1xf32> to vector<8x8xf32>
    %59 = arith.subf %55, %58 : vector<8x8xf32>
    %60 = math.exp %59 : vector<8x8xf32>
    %cst_18 = arith.constant dense<0.000000e+00> : vector<8xf32>
    %61 = vector.multi_reduction <add>, %60, %cst_18 [1] : vector<8x8xf32> to vector<8xf32>
    %62 = vector.shape_cast %61 : vector<8xf32> to vector<8x1xf32>
    %63 = tpu.reciprocal %62 {approx = true} : vector<8x1xf32> -> vector<8x1xf32>
    %64 = vector.broadcast %63 : vector<8x1xf32> to vector<8x8xf32>
    %65 = arith.mulf %60, %64 : vector<8x8xf32>
    %cst_19 = arith.constant dense<0.000000e+00> : vector<8x8xf32>
    %66 = tpu.matmul %65, %51, %cst_19 {dimension_numbers = #tpu.dot_dimension_numbers<[1], [0], [0], [1], [0, 0, 1, 1], [], []>} : vector<8x8xf32>, vector<8x8xf32>, vector<8x8xf32> -> vector<8x8xf32>
    %67 = vector.extract_strided_slice %48 {offsets = [0, 8], sizes = [8, 8], strides = [1, 1]} : vector<8x96xf32> to vector<8x8xf32>
    %68 = vector.extract_strided_slice %48 {offsets = [0, 40], sizes = [8, 8], strides = [1, 1]} : vector<8x96xf32> to vector<8x8xf32>
    %69 = vector.extract_strided_slice %48 {offsets = [0, 72], sizes = [8, 8], strides = [1, 1]} : vector<8x96xf32> to vector<8x8xf32>
    "tpu.trace_start"() <{level = 10 : i32, message = "qd,kd->qk"}> : () -> ()
    %cst_20 = arith.constant dense<0.000000e+00> : vector<8x8xf32>
    %70 = tpu.matmul %67, %68, %cst_20 {dimension_numbers = #tpu.dot_dimension_numbers<[1], [1], [0], [0], [0, 0, 1, 0], [], []>} : vector<8x8xf32>, vector<8x8xf32>, vector<8x8xf32> -> vector<8x8xf32>
    "tpu.trace_stop"() : () -> ()
    %cst_21 = arith.constant 0.353553385 : f32
    %71 = vector.broadcast %cst_21 : f32 to vector<8x8xf32>
    %72 = arith.mulf %70, %71 : vector<8x8xf32>
    %73 = arith.addf %72, %18 : vector<8x8xf32>
    %cst_22 = arith.constant dense<0xFF800000> : vector<8xf32>
    %74 = vector.multi_reduction <maximumf>, %73, %cst_22 [1] : vector<8x8xf32> to vector<8xf32>
    %75 = vector.shape_cast %74 : vector<8xf32> to vector<8x1xf32>
    %76 = vector.broadcast %75 : vector<8x1xf32> to vector<8x8xf32>
    %77 = arith.subf %73, %76 : vector<8x8xf32>
    %78 = math.exp %77 : vector<8x8xf32>
    %cst_23 = arith.constant dense<0.000000e+00> : vector<8xf32>
    %79 = vector.multi_reduction <add>, %78, %cst_23 [1] : vector<8x8xf32> to vector<8xf32>
    %80 = vector.shape_cast %79 : vector<8xf32> to vector<8x1xf32>
    %81 = tpu.reciprocal %80 {approx = true} : vector<8x1xf32> -> vector<8x1xf32>
    %82 = vector.broadcast %81 : vector<8x1xf32> to vector<8x8xf32>
    %83 = arith.mulf %78, %82 : vector<8x8xf32>
    %cst_24 = arith.constant dense<0.000000e+00> : vector<8x8xf32>
    %84 = tpu.matmul %83, %69, %cst_24 {dimension_numbers = #tpu.dot_dimension_numbers<[1], [0], [0], [1], [0, 0, 1, 1], [], []>} : vector<8x8xf32>, vector<8x8xf32>, vector<8x8xf32> -> vector<8x8xf32>
    %85 = vector.extract_strided_slice %48 {offsets = [0, 16], sizes = [8, 8], strides = [1, 1]} : vector<8x96xf32> to vector<8x8xf32>
    %86 = vector.extract_strided_slice %48 {offsets = [0, 48], sizes = [8, 8], strides = [1, 1]} : vector<8x96xf32> to vector<8x8xf32>
    %87 = vector.extract_strided_slice %48 {offsets = [0, 80], sizes = [8, 8], strides = [1, 1]} : vector<8x96xf32> to vector<8x8xf32>
    "tpu.trace_start"() <{level = 10 : i32, message = "qd,kd->qk"}> : () -> ()
    %cst_25 = arith.constant dense<0.000000e+00> : vector<8x8xf32>
    %88 = tpu.matmul %85, %86, %cst_25 {dimension_numbers = #tpu.dot_dimension_numbers<[1], [1], [0], [0], [0, 0, 1, 0], [], []>} : vector<8x8xf32>, vector<8x8xf32>, vector<8x8xf32> -> vector<8x8xf32>
    "tpu.trace_stop"() : () -> ()
    %cst_26 = arith.constant 0.353553385 : f32
    %89 = vector.broadcast %cst_26 : f32 to vector<8x8xf32>
    %90 = arith.mulf %88, %89 : vector<8x8xf32>
    %91 = arith.addf %90, %18 : vector<8x8xf32>
    %cst_27 = arith.constant dense<0xFF800000> : vector<8xf32>
    %92 = vector.multi_reduction <maximumf>, %91, %cst_27 [1] : vector<8x8xf32> to vector<8xf32>
    %93 = vector.shape_cast %92 : vector<8xf32> to vector<8x1xf32>
    %94 = vector.broadcast %93 : vector<8x1xf32> to vector<8x8xf32>
    %95 = arith.subf %91, %94 : vector<8x8xf32>
    %96 = math.exp %95 : vector<8x8xf32>
    %cst_28 = arith.constant dense<0.000000e+00> : vector<8xf32>
    %97 = vector.multi_reduction <add>, %96, %cst_28 [1] : vector<8x8xf32> to vector<8xf32>
    %98 = vector.shape_cast %97 : vector<8xf32> to vector<8x1xf32>
    %99 = tpu.reciprocal %98 {approx = true} : vector<8x1xf32> -> vector<8x1xf32>
    %100 = vector.broadcast %99 : vector<8x1xf32> to vector<8x8xf32>
    %101 = arith.mulf %96, %100 : vector<8x8xf32>
    %cst_29 = arith.constant dense<0.000000e+00> : vector<8x8xf32>
    %102 = tpu.matmul %101, %87, %cst_29 {dimension_numbers = #tpu.dot_dimension_numbers<[1], [0], [0], [1], [0, 0, 1, 1], [], []>} : vector<8x8xf32>, vector<8x8xf32>, vector<8x8xf32> -> vector<8x8xf32>
    %103 = vector.extract_strided_slice %48 {offsets = [0, 24], sizes = [8, 8], strides = [1, 1]} : vector<8x96xf32> to vector<8x8xf32>
    %104 = vector.extract_strided_slice %48 {offsets = [0, 56], sizes = [8, 8], strides = [1, 1]} : vector<8x96xf32> to vector<8x8xf32>
    %105 = vector.extract_strided_slice %48 {offsets = [0, 88], sizes = [8, 8], strides = [1, 1]} : vector<8x96xf32> to vector<8x8xf32>
    "tpu.trace_start"() <{level = 10 : i32, message = "qd,kd->qk"}> : () -> ()
    %cst_30 = arith.constant dense<0.000000e+00> : vector<8x8xf32>
    %106 = tpu.matmul %103, %104, %cst_30 {dimension_numbers = #tpu.dot_dimension_numbers<[1], [1], [0], [0], [0, 0, 1, 0], [], []>} : vector<8x8xf32>, vector<8x8xf32>, vector<8x8xf32> -> vector<8x8xf32>
    "tpu.trace_stop"() : () -> ()
    %cst_31 = arith.constant 0.353553385 : f32
    %107 = vector.broadcast %cst_31 : f32 to vector<8x8xf32>
    %108 = arith.mulf %106, %107 : vector<8x8xf32>
    %109 = arith.addf %108, %18 : vector<8x8xf32>
    %cst_32 = arith.constant dense<0xFF800000> : vector<8xf32>
    %110 = vector.multi_reduction <maximumf>, %109, %cst_32 [1] : vector<8x8xf32> to vector<8xf32>
    %111 = vector.shape_cast %110 : vector<8xf32> to vector<8x1xf32>
    %112 = vector.broadcast %111 : vector<8x1xf32> to vector<8x8xf32>
    %113 = arith.subf %109, %112 : vector<8x8xf32>
    %114 = math.exp %113 : vector<8x8xf32>
    %cst_33 = arith.constant dense<0.000000e+00> : vector<8xf32>
    %115 = vector.multi_reduction <add>, %114, %cst_33 [1] : vector<8x8xf32> to vector<8xf32>
    %116 = vector.shape_cast %115 : vector<8xf32> to vector<8x1xf32>
    %117 = tpu.reciprocal %116 {approx = true} : vector<8x1xf32> -> vector<8x1xf32>
    %118 = vector.broadcast %117 : vector<8x1xf32> to vector<8x8xf32>
    %119 = arith.mulf %114, %118 : vector<8x8xf32>
    %cst_34 = arith.constant dense<0.000000e+00> : vector<8x8xf32>
    %120 = tpu.matmul %119, %105, %cst_34 {dimension_numbers = #tpu.dot_dimension_numbers<[1], [0], [0], [1], [0, 0, 1, 1], [], []>} : vector<8x8xf32>, vector<8x8xf32>, vector<8x8xf32> -> vector<8x8xf32>
    %121 = tpu.concatenate %66, %84, %102, %120 in 1 : vector<8x8xf32>, vector<8x8xf32>, vector<8x8xf32>, vector<8x8xf32> -> vector<8x32xf32>
    %c0_35 = arith.constant 0 : index
    %c0_36 = arith.constant 0 : index
    %c0_37 = arith.constant 0 : index
    %122 = vector.load %arg5[%c0_35, %c0_36, %c0_37] : memref<1x32x32xf32, #tpu.memory_space<vmem>>, vector<1x32x32xf32>
    %123 = vector.shape_cast %122 : vector<1x32x32xf32> to vector<32x32xf32>
    %cst_38 = arith.constant dense<0.000000e+00> : vector<8x32xf32>
    %124 = tpu.matmul %121, %123, %cst_38 {dimension_numbers = #tpu.dot_dimension_numbers<[1], [0], [0], [1], [0, 0, 1, 1], [], []>} : vector<8x32xf32>, vector<32x32xf32>, vector<8x32xf32> -> vector<8x32xf32>
    %125 = arith.addf %19, %124 : vector<8x32xf32>
    %126 = vector.broadcast %7 : vector<1x32xf32> to vector<8x32xf32>
    %127 = arith.addf %125, %126 : vector<8x32xf32>
    %cst_39 = arith.constant dense<0.000000e+00> : vector<8xf32>
    %128 = vector.multi_reduction <add>, %127, %cst_39 [1] : vector<8x32xf32> to vector<8xf32>
    %129 = vector.shape_cast %128 : vector<8xf32> to vector<8x1xf32>
    %cst_40 = arith.constant 3.200000e+01 : f32
    %130 = vector.broadcast %cst_40 : f32 to vector<8x1xf32>
    %131 = arith.divf %129, %130 : vector<8x1xf32>
    %132 = vector.broadcast %131 : vector<8x1xf32> to vector<8x32xf32>
    %133 = arith.subf %127, %132 : vector<8x32xf32>
    %134 = vector.broadcast %131 : vector<8x1xf32> to vector<8x32xf32>
    %135 = arith.subf %127, %134 : vector<8x32xf32>
    %136 = arith.mulf %133, %135 : vector<8x32xf32>
    %cst_41 = arith.constant dense<0.000000e+00> : vector<8xf32>
    %137 = vector.multi_reduction <add>, %136, %cst_41 [1] : vector<8x32xf32> to vector<8xf32>
    %138 = vector.shape_cast %137 : vector<8xf32> to vector<8x1xf32>
    %cst_42 = arith.constant 3.200000e+01 : f32
    %139 = vector.broadcast %cst_42 : f32 to vector<8x1xf32>
    %140 = arith.divf %138, %139 : vector<8x1xf32>
    %141 = vector.broadcast %131 : vector<8x1xf32> to vector<8x32xf32>
    %142 = arith.subf %127, %141 : vector<8x32xf32>
    %cst_43 = arith.constant 9.99999974E-6 : f32
    %143 = vector.broadcast %cst_43 : f32 to vector<8x1xf32>
    %144 = arith.addf %140, %143 : vector<8x1xf32>
    %145 = math.rsqrt %144 : vector<8x1xf32>
    %146 = vector.broadcast %145 : vector<8x1xf32> to vector<8x32xf32>
    %147 = arith.mulf %142, %146 : vector<8x32xf32>
    %148 = vector.broadcast %8 : vector<1x32xf32> to vector<8x32xf32>
    %149 = arith.mulf %147, %148 : vector<8x32xf32>
    %150 = vector.broadcast %9 : vector<1x32xf32> to vector<8x32xf32>
    %151 = arith.addf %149, %150 : vector<8x32xf32>
    %c0_44 = arith.constant 0 : index
    %c0_45 = arith.constant 0 : index
    %c0_46 = arith.constant 0 : index
    %152 = vector.load %arg6[%c0_44, %c0_45, %c0_46] : memref<1x32x128xf32, #tpu.memory_space<vmem>>, vector<1x32x128xf32>
    %153 = vector.shape_cast %152 : vector<1x32x128xf32> to vector<32x128xf32>
    %cst_47 = arith.constant dense<0.000000e+00> : vector<8x128xf32>
    %154 = tpu.matmul %151, %153, %cst_47 {dimension_numbers = #tpu.dot_dimension_numbers<[1], [0], [0], [1], [0, 0, 1, 1], [], []>} : vector<8x32xf32>, vector<32x128xf32>, vector<8x128xf32> -> vector<8x128xf32>
    %155 = vector.broadcast %10 : vector<1x128xf32> to vector<8x128xf32>
    %156 = arith.addf %154, %155 : vector<8x128xf32>
    %cst_48 = arith.constant 1.702000e+00 : f32
    %157 = vector.broadcast %cst_48 : f32 to vector<8x128xf32>
    %158 = arith.mulf %157, %156 : vector<8x128xf32>
    %159 = arith.negf %158 : vector<8x128xf32>
    %160 = math.exp %159 : vector<8x128xf32>
    %cst_49 = arith.constant 1.000000e+00 : f32
    %161 = vector.broadcast %cst_49 : f32 to vector<8x128xf32>
    %162 = arith.addf %161, %160 : vector<8x128xf32>
    %163 = arith.divf %161, %162 : vector<8x128xf32>
    %164 = arith.mulf %156, %163 : vector<8x128xf32>
    %c0_50 = arith.constant 0 : index
    %c0_51 = arith.constant 0 : index
    %c0_52 = arith.constant 0 : index
    %165 = vector.load %arg7[%c0_50, %c0_51, %c0_52] : memref<1x128x32xf32, #tpu.memory_space<vmem>>, vector<1x128x32xf32>
    %166 = vector.shape_cast %165 : vector<1x128x32xf32> to vector<128x32xf32>
    %cst_53 = arith.constant dense<0.000000e+00> : vector<8x32xf32>
    %167 = tpu.matmul %164, %166, %cst_53 {dimension_numbers = #tpu.dot_dimension_numbers<[1], [0], [0], [1], [0, 0, 1, 1], [], []>} : vector<8x128xf32>, vector<128x32xf32>, vector<8x32xf32> -> vector<8x32xf32>
    %168 = arith.addf %127, %167 : vector<8x32xf32>
    %169 = vector.broadcast %11 : vector<1x32xf32> to vector<8x32xf32>
    %170 = arith.addf %168, %169 : vector<8x32xf32>
    %c0_54 = arith.constant 0 : index
    %c0_55 = arith.constant 0 : index
    %171 = vector.load %arg12[%c0_54, %c0_55] : memref<8x32xf32, #tpu.memory_space<vmem>>, vector<8x32xf32>
    tpu.vector_store %arg12[%c0_54, %c0_55], %170 {strides = array<i32>} : memref<8x32xf32, #tpu.memory_space<vmem>>, vector<8x32xf32>,
    %c1_i32 = arith.constant 1 : i32
    %172 = arith.cmpi eq, %arg1, %c1_i32 : i32
    %173 = arith.extui %172 : i1 to i32
    %c0_i32_56 = arith.constant 0 : i32
    %174 = arith.cmpi ne, %173, %c0_i32_56 : i32
    scf.if %174 {
      %c0_57 = arith.constant 0 : index
      %c0_58 = arith.constant 0 : index
      %175 = vector.load %arg9[%c0_57, %c0_58] : memref<2x32xf32, #tpu.memory_space<vmem>>, vector<2x32xf32>
      %176 = arith.index_cast %arg0 : i32 to index
      %177 = memref.load %arg2[%176] : memref<3xi32, #tpu.memory_space<smem>>
      %178 = arith.index_cast %177 : i32 to index
      %c0_59 = arith.constant 0 : index
      %179 = vector.load %arg12[%178, %c0_59] : memref<8x32xf32, #tpu.memory_space<vmem>>, vector<1x32xf32>
      %180 = vector.extract_strided_slice %175 {offsets = [0, 0], sizes = [1, 32], strides = [1, 1]} : vector<2x32xf32> to vector<1x32xf32>
      %181 = vector.extract_strided_slice %175 {offsets = [1, 0], sizes = [1, 32], strides = [1, 1]} : vector<2x32xf32> to vector<1x32xf32>
      %cst_60 = arith.constant dense<0.000000e+00> : vector<1xf32>
      %182 = vector.multi_reduction <add>, %179, %cst_60 [1] : vector<1x32xf32> to vector<1xf32>
      %183 = vector.shape_cast %182 : vector<1xf32> to vector<1x1xf32>
      %cst_61 = arith.constant 3.200000e+01 : f32
      %184 = vector.broadcast %cst_61 : f32 to vector<1x1xf32>
      %185 = arith.divf %183, %184 : vector<1x1xf32>
      %186 = vector.broadcast %185 : vector<1x1xf32> to vector<1x32xf32>
      %187 = arith.subf %179, %186 : vector<1x32xf32>
      %188 = vector.broadcast %185 : vector<1x1xf32> to vector<1x32xf32>
      %189 = arith.subf %179, %188 : vector<1x32xf32>
      %190 = arith.mulf %187, %189 : vector<1x32xf32>
      %cst_62 = arith.constant dense<0.000000e+00> : vector<1xf32>
      %191 = vector.multi_reduction <add>, %190, %cst_62 [1] : vector<1x32xf32> to vector<1xf32>
      %192 = vector.shape_cast %191 : vector<1xf32> to vector<1x1xf32>
      %cst_63 = arith.constant 3.200000e+01 : f32
      %193 = vector.broadcast %cst_63 : f32 to vector<1x1xf32>
      %194 = arith.divf %192, %193 : vector<1x1xf32>
      %195 = vector.broadcast %185 : vector<1x1xf32> to vector<1x32xf32>
      %196 = arith.subf %179, %195 : vector<1x32xf32>
      %cst_64 = arith.constant 9.99999974E-6 : f32
      %197 = vector.broadcast %cst_64 : f32 to vector<1x1xf32>
      %198 = arith.addf %194, %197 : vector<1x1xf32>
      %199 = math.rsqrt %198 : vector<1x1xf32>
      %200 = vector.broadcast %199 : vector<1x1xf32> to vector<1x32xf32>
      %201 = arith.mulf %196, %200 : vector<1x32xf32>
      %202 = arith.mulf %201, %180 : vector<1x32xf32>
      %203 = arith.addf %202, %181 : vector<1x32xf32>
      %c0_65 = arith.constant 0 : index
      %c0_66 = arith.constant 0 : index
      %204 = vector.load %arg10[%c0_65, %c0_66] : memref<32x16xf32, #tpu.memory_space<vmem>>, vector<32x16xf32>
      %cst_67 = arith.constant dense<0.000000e+00> : vector<1x16xf32>
      %205 = tpu.matmul %203, %204, %cst_67 {dimension_numbers = #tpu.dot_dimension_numbers<[1], [0], [0], [1], [0, 0, 1, 1], [], []>} : vector<1x32xf32>, vector<32x16xf32>, vector<1x16xf32> -> vector<1x16xf32>
      %c0_68 = arith.constant 0 : index
      %c0_69 = arith.constant 0 : index
      %c0_70 = arith.constant 0 : index
      %206 = vector.load %arg11[%c0_68, %c0_69, %c0_70] : memref<1x1x16xf32, #tpu.memory_space<vmem>>, vector<1x1x16xf32>
      %207 = vector.shape_cast %206 : vector<1x1x16xf32> to vector<1x16xf32>
      %208 = vector.shape_cast %205 : vector<1x16xf32> to vector<1x1x16xf32>
      tpu.vector_store %arg11[%c0_68, %c0_69, %c0_70], %208 {strides = array<i32>} : memref<1x1x16xf32, #tpu.memory_space<vmem>>, vector<1x1x16xf32>,
    } else {
    }
    return
  }
  func.func @transform_0(%arg0: i32, %arg1: i32, %arg2: memref<3xi32, #tpu.memory_space<smem>>) -> (i32, i32, i32) {
    %c0_i32 = arith.constant 0 : i32
    %c0_i32_0 = arith.constant 0 : i32
    %c0_i32_1 = arith.constant 0 : i32
    return %arg0, %c0_i32, %c0_i32_0 : i32, i32, i32
  }
  func.func @transform_1(%arg0: i32, %arg1: i32, %arg2: memref<3xi32, #tpu.memory_space<smem>>) -> (i32, i32, i32) {
    %c0_i32 = arith.constant 0 : i32
    %c0_i32_0 = arith.constant 0 : i32
    %c0_i32_1 = arith.constant 0 : i32
    return %arg1, %c0_i32, %c0_i32_0 : i32, i32, i32
  }
  func.func @transform_2(%arg0: i32, %arg1: i32, %arg2: memref<3xi32, #tpu.memory_space<smem>>) -> (i32, i32, i32) {
    %c0_i32 = arith.constant 0 : i32
    %c0_i32_0 = arith.constant 0 : i32
    %c0_i32_1 = arith.constant 0 : i32
    return %arg1, %c0_i32, %c0_i32_0 : i32, i32, i32
  }
  func.func @transform_3(%arg0: i32, %arg1: i32, %arg2: memref<3xi32, #tpu.memory_space<smem>>) -> (i32, i32, i32) {
    %c0_i32 = arith.constant 0 : i32
    %c0_i32_0 = arith.constant 0 : i32
    %c0_i32_1 = arith.constant 0 : i32
    return %arg1, %c0_i32, %c0_i32_0 : i32, i32, i32
  }
  func.func @transform_4(%arg0: i32, %arg1: i32, %arg2: memref<3xi32, #tpu.memory_space<smem>>) -> (i32, i32, i32) {
    %c0_i32 = arith.constant 0 : i32
    %c0_i32_0 = arith.constant 0 : i32
    %c0_i32_1 = arith.constant 0 : i32
    return %arg1, %c0_i32, %c0_i32_0 : i32, i32, i32
  }
  func.func @transform_5(%arg0: i32, %arg1: i32, %arg2: memref<3xi32, #tpu.memory_space<smem>>) -> (i32, i32, i32) {
    %c0_i32 = arith.constant 0 : i32
    %c0_i32_0 = arith.constant 0 : i32
    %c0_i32_1 = arith.constant 0 : i32
    return %arg1, %c0_i32, %c0_i32_0 : i32, i32, i32
  }
  func.func @transform_6(%arg0: i32, %arg1: i32, %arg2: memref<3xi32, #tpu.memory_space<smem>>) -> (i32, i32) {
    %c0_i32 = arith.constant 0 : i32
    %c0_i32_0 = arith.constant 0 : i32
    %c0_i32_1 = arith.constant 0 : i32
    return %c0_i32, %c0_i32_0 : i32, i32
  }
  func.func @transform_7(%arg0: i32, %arg1: i32, %arg2: memref<3xi32, #tpu.memory_space<smem>>) -> (i32, i32) {
    %c0_i32 = arith.constant 0 : i32
    %c0_i32_0 = arith.constant 0 : i32
    %c0_i32_1 = arith.constant 0 : i32
    return %c0_i32, %c0_i32_0 : i32, i32
  }
  func.func @transform_8(%arg0: i32, %arg1: i32, %arg2: memref<3xi32, #tpu.memory_space<smem>>) -> (i32, i32, i32) {
    %c0_i32 = arith.constant 0 : i32
    %c0_i32_0 = arith.constant 0 : i32
    %c0_i32_1 = arith.constant 0 : i32
    return %arg0, %c0_i32, %c0_i32_0 : i32, i32, i32
  }
}

</mosaic_0001>

<bundles_post_ra>
// kernel: tpu_custom_call.1
= control target key start
LH: loop header
LB: loop body
LE: loop exit
PB: predicated region body
PF: predicated region fallthrough
CT: control target
= control target key end

     0   :  { %s2645_s0 = inlined_call_operand.vmem [shape: s32[3], index: 0, kind: input, shape index: {}]   ;;  %s2646_s1 = inlined_call_operand.vmem [shape: f32[3,8,32], index: 1, kind: input, shape index: {}]   ;;  %s2647_s2 = inlined_call_operand.vmem [shape: f32[2,32,96], index: 2, kind: input, shape index: {}]   ;;  %s2648_s3 = inlined_call_operand.vmem [shape: f32[2,32,32], index: 3, kind: input, shape index: {}]   ;;  %s2649_s4 = inlined_call_operand.vmem [shape: f32[2,32,128], index: 4, kind: input, shape index: {}]   ;;  %s2650_s5 = inlined_call_operand.vmem [shape: f32[2,128,32], index: 5, kind: input, shape index: {}]   ;;  %s2651_s6 = inlined_call_operand.vmem [shape: f32[2,8,128], index: 6, kind: input, shape index: {}]   ;;  %s2652_s7 = inlined_call_operand.vmem [shape: f32[2,32], index: 7, kind: input, shape index: {}]   ;;  %s2653_s8 = inlined_call_operand.vmem [shape: f32[32,16], index: 8, kind: input, shape index: {}]   ;;  %s2654_s9 = inlined_call_operand.hbm [shape: f32[3,1,16], index: 9, kind: output, shape index: {}]  }
   0x1   :  { %s14_s11 = sshll.u32 %s2645_s0, 4  ;;  %s15_s11 = int_to_ptr.vmem [resolvable:$true] %s14_s11 }
   0x2   :  { %s2136_s12 = scalar_lea.vmem %s15_s11, 16  ;;  %p2141_p1 = scmp.lt.s32.totalorder %s15_s11, %s15_s11 }
   0x3   :  { %p2137_p0 = scmp.ne.s32.totalorder %s15_s11, %s2136_s12  ;;  %p2142_p2 = scmp.lt.s32.totalorder %s2136_s12, %s2136_s12 }
   0x5   :  { %p2143_p3 = por %p2142_p2, %p2141_p1 }
   0x7   :  { %p2144_p4 = pnand %p2143_p3, %p2137_p0 }
   0x9   :  { %2147 = shalt.err (!%p2144_p4)  }
   0xa   :  { %s2246_s13 = smov [#allocation4]  }
   0xb   :  { %17 = dma.vmem_to_smem %s15_s11, 16, %s2246_s13, [#allocation3] }
   0xc   :  { %2208 = dma.done.wait [#allocation3], 16 }
   0xd   :  { %2209 = vsyncadd [#allocation3], 4294967280 }
   0xe   :  { %19 = sfence }
   0xf   :  { %20 = vsyncpa [#allocation6], 0 }
  0x10   :  { %22 = vsyncpa [#allocation6 + $0x1], 0  ;;  %s2322_s14 = smov 0   ;;  %s2324_s15 = smov 0  }
  0x11   :  { %s2326_s0 = smov 0   ;;  %s2328_s16 = smov 0  }
  0x12   :  { %s2330_s17 = smov 0   ;;  %s2332_s18 = smov 0  }
  0x13   :  { %s2334_s19 = smov 0   ;;  %s2336_s20 = smov 0  }
  0x14 LB: > { %2663 = sst [smem:[#allocation9_spill]] %s2216_s14  ;;  %s1756_s21 = sadd.s32 4294967295, %s2244_s20   ;;  %s2244_s20 = sphi %s2336_s20, %s28_s20   ;;  %s2240_s19 = sphi %s2334_s19, %s2684_s19   ;;  %s2236_s18 = sphi %s2332_s18, %s2683_s18   ;;  %s2232_s17 = sphi %s2330_s17, %s2682_s17   ;;  %s2228_s16 = sphi %s2328_s16, %s2681_s16   ;;  %s2224_s0 = sphi %s2326_s0, %s2680_s0   ;;  %s2220_s15 = sphi %s2324_s15, %s2686_s15   ;;  %s2216_s14 = sphi %s2322_s14, %s2685_s14  }
  0x15   : > { %2664 = sst [smem:[#allocation10_spill]] %s2224_s0  ;;  %s1757_s22 = sadd.s32 4294967294, %s2244_s20  }
  0x16   : > { %2665 = sst [smem:[#allocation11_spill]] %s2236_s18  ;;  %s37_s23 = sadd.s32 1, %s2236_s18 }
  0x17   : > { %2666 = sst [smem:[#allocation12_spill]] %s2240_s19  ;;  %p38_p5 = scmp.ge.s32.totalorder %s37_s23, 2 }
  0x18   : > { %2667 = sst [smem:[#allocation13_spill]] %s2244_s20  ;;  %s40_s24 = sadd.s32 1, %s2240_s19 }
  0x19   : > { %p255_p6 = scmp.ne.s32.totalorder %s2224_s0, %s2220_s15  ;;  %p256_p7 = scmp.eq.s32.totalorder %s1756_s21, 5 }
  0x1a   : > { %s2688_s23 = smov (%p38_p5, %s37_s23), 0  ;;  %s2690_s24 = smov (!%p38_p5, %s40_s24), %s2240_s19 }
  0x1b   : > { %2668 = sst [smem:[#allocation14_spill]] %s2688_s23  ;;  %p2371_p8 = por %p256_p7, %p255_p6 }
  0x1c   : > { %p261_p9 = scmp.ne.s32.totalorder %s2220_s15, %s2216_s14  ;;  %p42_p10 = scmp.ge.s32.totalorder %s2690_s24, 3 }
  0x1d   : > { %p262_p11 = scmp.eq.s32.totalorder %s1757_s22, 5  ;;  %p1760_p12 = scmp.ge.s32.totalorder %s2244_s20, 1 }
  0x1e   : > { %p332_p13 = scmp.lt.s32.totalorder %s2244_s20, 7  ;;  %s2692_s24 = smov (%p42_p10, %s2690_s24), 0 }
  0x1f   : > { %2670 = sst [smem:[#allocation15_spill]] %s2692_s24  ;;  %p2381_p0 = por %p262_p11, %p261_p9 }
  0x20   : > { %p333_p1 = pnand %p1760_p12, %p332_p13  ;;  %s242_s27 = ssub.s32 %s2240_s19, %s2692_s24 }
  0x21   : > { %s2671_s26 = scalar_select %p2381_p0, 1, 0 }
  0x22   : > { %s245_s28 = sadd.s32 1, %s2224_s0  ;;  %p243_p2 = scmp.eq.s32.totalorder %s242_s27, 0 }
  0x23   : > { %2672 = sst [smem:[#allocation16_spill]] %s2671_s26  ;;  %336 = sbr.rel (%p333_p1) target bundleno = 3123 (0xc33), region = 52 }
  0x24   : > { %s2389_s29 = scalar_select %p243_p2, %s2224_s0, %s245_s28  }
  0x25   : > { %p388_p3 = scmp.lt.s32.totalorder (!%p333_p1), %s2232_s17, 2  ;;  %p392_p4 = scmp.lt.s32.totalorder (!%p333_p1), %s2228_s16, 1 }
  0x26   : > { %2673 = sst [smem:[#allocation17_spill]] %s2389_s29  ;;  %s2674_s18 = sand.u32 (!%p333_p1), 1, %s2220_s15  }
  0x27   : > { %s2424_s19 = scalar_lea.vmem (!%p333_p1), [#allocation5], %s2674_s18  ;;  %p1771_p5 = scmp.ne.s32.totalorder (!%p333_p1), %s2228_s16, 0 }
  0x2a   : > { %s389_s10 = scalar_select %p388_p3, %s2232_s17, 2 }
  0x2b   : > { %s393_s11 = scalar_select %p392_p4, %s2228_s16, 1 }
  0x2c   : > { %s1761_s12 = sshll.u32 %s389_s10, 3  ;;  %419 = sbr.rel (%p1771_p5) target bundleno = 51 (0x33), region = 56  ;;  %vm421_vm0 = vcmask (!%p1771_p5), 261120  }
  0x2d   : > { %s391_s22 = scalar_lea.vmem %s2646_s1, %s1761_s12  ;;  %s1793_s27 = sshll.u32 %s393_s11, 5 }
  0x2e   : > { %s396_s23 = scalar_lea.vmem %s2647_s2, %s1793_s27  ;;  %s2405_s29 = scalar_lea.vmem %s2648_s3, %s1793_s27  ;;  %v420_v0 = vld [vmem:[%s391_s22] sm:$0xff] (!%p1771_p5) }
  0x2f   : > { %s2410_s26 = scalar_lea.vmem %s2649_s4, %s1793_s27  ;;  %s1796_s10 = sshll.u32 %s393_s11, 7  ;;  %422 = vst.msk [vmem:[#allocation2] sm:$0xff] (!%p1771_p5), %vm421_vm0, %v420_v0 }
  0x30   : > { %s2415_s12 = scalar_lea.vmem %s2650_s5, %s1796_s10  ;;  %s1770_s13 = sshll.u32 %s393_s11, 3 }
  0x31   : > { %s2420_s28 = scalar_lea.vmem %s2651_s6, %s1770_s13 }
  0x33 PF: > { %vm431_vm1 = vcmask 261120   ;;  %v456_v8 = vld [vmem:[%s396_s23] sm:$0xff]  ;;  %v457_v9 = vld [vmem:[%s396_s23 + $0x8] sm:$0xff]  ;;  %v458_v10 = vld [vmem:[%s396_s23 + $0x10] sm:$0xff]  ;;  %v2247_v11 = vmov 0.0|0.0   ;;  %vm2248_vm2 = vmmov 0   ;;  %v424_v18 = vlaneseq }
  0x34   : > { %1969 = vmatprep.subr.bf16.mxu1 %v2247_v11  ;;  %v1970_v12 = vpack.c.bf16 %v457_v9, %v456_v8  ;;  %v459_v13 = vld [vmem:[%s396_s23 + $0x18] sm:$0xff]  ;;  %v2249_v14 = vmov 0.0   ;;  %v2445_v22 = vld [vmem:[%s2420_s28] sm:$0xff]  ;;  %s2250_s14 = smov 120   ;;  %s2251_s0 = smov 96   ;;  %vm540_vm3 = vcmask 64512  }
  0x35   : > { %1858 = vmatprep.mubr.msk.f32.mxu1 %vm2248_vm2, %v2249_v14  ;;  %1871 = vmatprep.subr.mxu0 %v2249_v14  ;;  %v1973_v15 = vpack.c.bf16 %v459_v13, %v458_v10  ;;  %v2441_v20 = vshrl.u32 %v424_v18, 7  ;;  %s2252_s20 = smov 88   ;;  %s2253_s23 = smov 80   ;;  %v427_v42 = vand.u32 127, %v424_v18  ;;  %v2257_v44 = vmov -1e+09  }
  0x36   : > { %v2427_v1 = vld [vmem:[#allocation2] sm:$0xff]  ;;  %1873 = vmatprep.mubr.msk.f32.mxu0 %vm2248_vm2, %v2249_v14  ;;  %1971 = vmatpush3.bf16.msra.mxu1 %v1970_v12  ;;  %s2254_s30 = smov 112   ;;  %s2255_s11 = smov 72   ;;  %vm1218_vm5 = vcmask 130048   ;;  %vm1220_vm6 = vcmask 195584  }
  0x37   : > { %v432_v2 = vsel %vm431_vm1, %v2427_v1, 0.0  ;;  %1972 = vmatprep.subr.bf16.mxu1 %v2247_v11  ;;  %v448_v21 = vsub.s32 0, %v2441_v20  ;;  %v453_v23 = vsub.s32 1, %v2441_v20  ;;  %v462_v30 = vsub.s32 7, %v2441_v20  ;;  %s2256_s22 = smov 104   ;;  %s2258_s27 = smov 64  }
  0x38   : > { %433 = vadd.xlane.f32.xlu0 %v432_v2  ;;  %vm428_vm4 = vcmp.le.s32.totalorder %v427_v42, %v2441_v20  ;;  %s2259_s10 = smov 48   ;;  %s2260_s13 = smov 40   ;;  %v1222_v42 = vld [vmem:[%s2405_s29] sm:$0xff] }
  0x39   : > { %v449_v24 = vrot.slane %v2445_v22, %v448_v21  ;;  %v454_v27 = vrot.slane %v2445_v22, %v453_v23  ;;  %v463_v31 = vrot.slane %v2445_v22, %v462_v30  ;;  %v429_v45 = vsel %vm428_vm4, 0.0, %v2257_v44  ;;  %s2261_s21 = smov 56   ;;  %s2262_s24 = smov 8  }
  0x3a   : > { %1974 = vmatpush3.bf16.msra.mxu1 %v1973_v15  ;;  %s2263_s28 = smov 16   ;;  %s2264_s18 = smov 24  }
  0x3b   : > { %1861 = vmatprep.subr.mxu1 %v2249_v14  ;;  %p1788_p6 = scmp.ne.s32.totalorder %s2228_s16, 1 }
  0x3c   : > { %vm1518_vm7 = vcmask (!%p1788_p6), 253952   ;;  %vm2266_vm8 = vmmov (!%p1788_p6), 0   ;;  %vm1614_vm9 = vcmask (!%p1788_p6), 122880  }
  0xc5   : > { %v434_v3 = vpop.xlane.xlu0 %433 }
  0xc6   : > { %v436_v4 = vmul.f32 0.03125, %v434_v3 }
  0xc8   : > { %v437_v5 = vsub.f32 %v2427_v1, %v436_v4 }
  0xca   : > { %v438_v6 = vmul.f32 %v437_v5, %v437_v5 }
  0xcc   : > { %v439_v7 = vsel %vm431_vm1, %v438_v6, 0.0 }
  0xcd   : > { %440 = vadd.xlane.f32.xlu0 %v439_v7 }
 0x15a   : > { %v441_v16 = vpop.xlane.xlu0 %440 }
 0x15b   : > { %v442_v17 = vmul.f32 0.03125, %v441_v16 }
 0x15d   : > { %v443_v19 = vadd.f32 1e-05, %v442_v17 }
 0x15f   : > { %2110 = vrsqrt.f32 %v443_v19 }
 0x169   : > { %v2111_v25 = vpop.eup %2110 }
 0x16a   : > { %v445_v26 = vmul.f32 %v2111_v25, %v437_v5 }
 0x16c   : > { %v450_v28 = vmul.f32 %v449_v24, %v445_v26 }
 0x16e   : > { %v455_v29 = vadd.f32 %v454_v27, %v450_v28 }
 0x170   : > { %1859 = vmatmul.mubr.msk.f32.vlgmr.msra.gmra.mrb[0].mxu1 %vm431_vm1, %v455_v29 }
 0x171   : > { %1863 = vmatprep.mubr.msk.f32.mxu1 %vm2248_vm2, %v2249_v14 }
 0x243   : > { %v533_v32 = vpop.f32.mrb[0].mxu1 }
 0x244   : > { %v2455_v33 = vadd.f32 %v533_v32, %v463_v31  ;;  %v1860_v34 = vpop.f32.mrb[1].mxu1 }
 0x246   : > { %704 = vrot.lane.b32.xlu0 %v2455_v33, %s2250_s14  ;;  %538 = vrot.lane.b32.xlu1 %v2455_v33, %s2251_s0 }
 0x24a   : > { %706 = vrot.lane.b32.xlu1 %v2455_v33, %s2252_s20 }
 0x24e   : > { %873 = vrot.lane.b32.xlu1 %v2455_v33, %s2253_s23 }
 0x252   : > { %871 = vrot.lane.b32.xlu1 %v2455_v33, %s2254_s30 }
 0x256   : > { %1040 = vrot.lane.b32.xlu1 %v2455_v33, %s2255_s11 }
 0x25a   : > { %1038 = vrot.lane.b32.xlu1 %v2455_v33, %s2256_s22 }
 0x2b8   : > { %v539_v35 = vpop.permute.xlu1 %538  ;;  %v705_v37 = vpop.permute.xlu0 %704 }
 0x2b9   : > { %1862 = vmatpush3.xpose.msk.msra.mxu1 %vm540_vm3, %v539_v35 }
 0x2ba   : > { %1866 = vmatprep.subr.mxu1 %v2249_v14 }
 0x2bc   : > { %1864 = vmatmul.mubr.msk.f32.vlgmr.msra.gmra.mrb[2].mxu1 %vm540_vm3, %v2455_v33  ;;  %v707_v36 = vpop.permute.xlu1 %706 }
 0x2bd   : > { %1872 = vmatpush3.xpose.msk.msra.mxu0 %vm540_vm3, %v707_v36  ;;  %1868 = vmatprep.mubr.msk.f32.mxu1 %vm2248_vm2, %v2249_v14 }
 0x2be   : > { %1881 = vmatprep.subr.mxu0 %v2249_v14 }
 0x2c0   : > { %1874 = vmatmul.mubr.msk.f32.vlgmr.msra.gmra.mrb[0].mxu0 %vm540_vm3, %v705_v37  ;;  %v874_v38 = vpop.permute.xlu1 %873 }
 0x2c1   : > { %1882 = vmatpush3.xpose.msk.msra.mxu0 %vm540_vm3, %v874_v38  ;;  %1883 = vmatprep.mubr.msk.f32.mxu0 %vm2248_vm2, %v2249_v14 }
 0x2c2   : > { %1891 = vmatprep.subr.mxu0 %v2249_v14 }
 0x2c4   : > { %v872_v39 = vpop.permute.xlu1 %871 }
 0x2c5   : > { %1884 = vmatmul.mubr.msk.f32.vlgmr.msra.gmra.mrb[2].mxu0 %vm540_vm3, %v872_v39 }
 0x2c6   : > { %1893 = vmatprep.mubr.msk.f32.mxu0 %vm2248_vm2, %v2249_v14 }
 0x2c8   : > { %v1041_v40 = vpop.permute.xlu1 %1040 }
 0x2c9   : > { %1892 = vmatpush3.xpose.msk.msra.mxu0 %vm540_vm3, %v1041_v40 }
 0x2ca   : > { %1987 = vmatprep.subr.bf16.mxu0 %v2247_v11 }
 0x2cc   : > { %v1039_v41 = vpop.permute.xlu1 %1038 }
 0x2cd   : > { %1894 = vmatmul.mubr.msk.f32.vlgmr.msra.gmra.mrb[4].mxu0 %vm540_vm3, %v1039_v41 }
 0x2ce   : > { %1955 = vmatprep.mubr.msk.f32.mxu0 %vm2248_vm2, %v2249_v14 }
 0x38f   : > { %v611_v43 = vpop.f32.mrb[2].mxu1 }
 0x390   : > { %v615_v46 = vmul.f32 0.35355338, %v611_v43  ;;  %v1865_v47 = vpop.f32.mrb[3].mxu1  ;;  %v1223_v43 = vld [vmem:[%s2405_s29 + $0x8] sm:$0xff] }
 0x391   : > { %v1976_v44 = vpack.c.bf16 %v1223_v43, %v1222_v42  ;;  %v1224_v47 = vld [vmem:[%s2405_s29 + $0x10] sm:$0xff]  ;;  %v1425_v42 = vld [vmem:[%s2415_s12 + $0x40] sm:$0xff]  ;;  %v1426_v43 = vld [vmem:[%s2415_s12 + $0x48] sm:$0xff] }
 0x392   : > { %v616_v48 = vadd.f32 %v615_v46, %v429_v45 }
 0x393   : > { %v778_v49 = vpop.f32.mrb[0].mxu0 }
 0x394   : > { %v782_v50 = vmul.f32 0.35355338, %v778_v49  ;;  %v1875_v51 = vpop.f32.mrb[1].mxu0  ;;  %v617_v52 = vsel %vm540_vm3, %v616_v48, -inf }
 0x395   : > { %618 = vmax.xlane.f32.xlu1 %v617_v52 }
 0x396   : > { %v783_v53 = vadd.f32 %v782_v50, %v429_v45 }
 0x398   : > { %v945_v54 = vpop.f32.mrb[2].mxu0  ;;  %v784_v55 = vsel %vm540_vm3, %v783_v53, -inf }
 0x399   : > { %v949_v56 = vmul.f32 0.35355338, %v945_v54  ;;  %785 = vmax.xlane.f32.xlu0 %v784_v55  ;;  %v1885_v57 = vpop.f32.mrb[3].mxu0 }
 0x39b   : > { %v950_v58 = vadd.f32 %v949_v56, %v429_v45 }
 0x39d   : > { %v951_v59 = vsel %vm540_vm3, %v950_v58, -inf }
 0x39e   : > { %952 = vmax.xlane.f32.xlu1 %v951_v59 }
 0x3a0   : > { %v1112_v60 = vpop.f32.mrb[4].mxu0 }
 0x3a1   : > { %v1116_v61 = vmul.f32 0.35355338, %v1112_v60  ;;  %v1895_v62 = vpop.f32.mrb[5].mxu0 }
 0x3a2   : > { %v1302_v62 = vsub.s32 2, %v2441_v20 }
 0x3a3   : > { %v1117_v63 = vadd.f32 %v1116_v61, %v429_v45 }
 0x3a5   : > { %v1118_v0 = vsel %vm540_vm3, %v1117_v63, -inf }
 0x3a6   : > { %1119 = vmax.xlane.f32.xlu0 %v1118_v0 }
 0x3af   : > { %628 = vrot.lane.b32.xlu1 %v2455_v33, %s2258_s27 }
 0x422   : > { %v619_v2 = vpop.xlane.xlu1 %618 }
 0x423   : > { %v620_v3 = vsub.f32 %v616_v48, %v619_v2  ;;  %v1225_v48 = vld [vmem:[%s2405_s29 + $0x18] sm:$0xff] }
 0x424   : > { %v1979_v49 = vpack.c.bf16 %v1225_v48, %v1224_v47  ;;  %v1429_v48 = vld [vmem:[%s2415_s12 + $0x60] sm:$0xff] }
 0x425   : > { %v621_v4 = vmul.f32 1.442695, %v620_v3 }
 0x426   : > { %v786_v5 = vpop.xlane.xlu0 %785 }
 0x427   : > { %2112 = vpow2.f32 %v621_v4  ;;  %v787_v6 = vsub.f32 %v783_v53, %v786_v5 }
 0x429   : > { %v788_v7 = vmul.f32 1.442695, %v787_v6 }
 0x42b   : > { %2114 = vpow2.f32 %v788_v7  ;;  %v953_v8 = vpop.xlane.xlu1 %952 }
 0x42c   : > { %v954_v9 = vsub.f32 %v950_v58, %v953_v8 }
 0x42e   : > { %v955_v10 = vmul.f32 1.442695, %v954_v9 }
 0x42f   : > { %v629_v12 = vpop.permute.xlu1 %628 }
 0x430   : > { %2116 = vpow2.f32 %v955_v10  ;;  %1867 = vmatpush3.msra.mxu1 %v629_v12  ;;  %v1328_v10 = vld [vmem:[%s2410_s26] sm:$0xff]  ;;  %v1329_v12 = vld [vmem:[%s2410_s26 + $0x8] sm:$0xff] }
 0x431   : > { %v2113_v13 = vpop.eup %2112  ;;  %1876 = vmatprep.subr.mxu1 %v2249_v14 }
 0x432   : > { %v623_v15 = vsel %vm540_vm3, %v2113_v13, 0.0 }
 0x433   : > { %v1120_v16 = vpop.xlane.xlu0 %1119  ;;  %624 = vadd.xlane.f32.xlu1 %v623_v15  ;;  %v1331_v15 = vld [vmem:[%s2410_s26 + $0x18] sm:$0xff] }
 0x434   : > { %v1121_v17 = vsub.f32 %v1117_v63, %v1120_v16  ;;  %v1303_v63 = vrot.slane %v2445_v22, %v1302_v62 }
 0x435   : > { %v2115_v18 = vpop.eup %2114 }
 0x436   : > { %v1122_v19 = vmul.f32 1.442695, %v1121_v17  ;;  %v790_v21 = vsel %vm540_vm3, %v2115_v18, 0.0 }
 0x437   : > { %791 = vadd.xlane.f32.xlu0 %v790_v21  ;;  %v1320_v21 = vsub.s32 3, %v2441_v20 }
 0x438   : > { %2118 = vpow2.f32 %v1122_v19 }
 0x43a   : > { %v2117_v23 = vpop.eup %2116 }
 0x43b   : > { %v957_v24 = vsel %vm540_vm3, %v2117_v23, 0.0 }
 0x43c   : > { %958 = vadd.xlane.f32.xlu1 %v957_v24  ;;  %v1321_v24 = vrot.slane %v2445_v22, %v1320_v21 }
 0x442   : > { %v2119_v25 = vpop.eup %2118 }
 0x443   : > { %v1124_v26 = vsel %vm540_vm3, %v2119_v25, 0.0 }
 0x444   : > { %1125 = vadd.xlane.f32.xlu0 %v1124_v26 }
 0x44d   : > { %962 = vrot.lane.b32.xlu1 %v2455_v33, %s2259_s10 }
 0x451   : > { %1129 = vrot.lane.b32.xlu1 %v2455_v33, %s2260_s13 }
 0x45a   : > { %795 = vrot.lane.b32.xlu0 %v2455_v33, %s2261_s21 }
 0x4c0   : > { %v625_v27 = vpop.xlane.xlu1 %624 }
 0x4c1   : > { %2120 = vrcp.f32 %v625_v27 }
 0x4c4   : > { %v792_v28 = vpop.xlane.xlu0 %791 }
 0x4c5   : > { %2122 = vrcp.f32 %v792_v28 }
 0x4c9   : > { %v959_v29 = vpop.xlane.xlu1 %958 }
 0x4ca   : > { %2124 = vrcp.f32 %v959_v29 }
 0x4cb   : > { %v2121_v30 = vpop.eup %2120 }
 0x4cc   : > { %v627_v31 = vmul.f32 %v2121_v30, %v2113_v13  ;;  %v1330_v13 = vld [vmem:[%s2410_s26 + $0x10] sm:$0xff]  ;;  %v1417_v30 = vld [vmem:[%s2415_s12] sm:$0xff]  ;;  %s1515_s26 = sld [smem:[#allocation4 + %s2232_s17]] (!%p1788_p6) }
 0x4cd   : > { %v963_v36 = vpop.permute.xlu1 %962  ;;  %v1985_v16 = vpack.c.bf16 %v1331_v15, %v1330_v13  ;;  %v1539_v13 = vld [vmem:[%s2653_s8 + $0x10] sm:$0xff] (!%p1788_p6)  ;;  %v2265_v15 = vmov (!%p1788_p6), 0.0|0.0  }
 0x4ce   : > { %1869 = vmatmul.mubr.msk.f32.vlgmr.msra.gmra.mrb[4].mxu1 %vm540_vm3, %v627_v31  ;;  %v1418_v31 = vld [vmem:[%s2415_s12 + $0x8] sm:$0xff] }
 0x4cf   : > { %1878 = vmatprep.mubr.msk.f32.mxu1 %vm2248_vm2, %v2249_v14  ;;  %v2123_v34 = vpop.eup %2122 }
 0x4d0   : > { %v794_v35 = vmul.f32 %v2123_v34, %v2115_v18  ;;  %v1419_v34 = vld [vmem:[%s2415_s12 + $0x10] sm:$0xff] }
 0x4d1   : > { %v1126_v32 = vpop.xlane.xlu0 %1125  ;;  %v1130_v39 = vpop.permute.xlu1 %1129 }
 0x4d2   : > { %2126 = vrcp.f32 %v1126_v32  ;;  %v1988_v32 = vpack.c.bf16 %v1418_v31, %v1417_v30  ;;  %s1516_s29 = scalar_lea.vmem (!%p1788_p6), [#allocation2], %s1515_s26 }
 0x4d4   : > { %v2125_v33 = vpop.eup %2124  ;;  %1989 = vmatpush3.bf16.msra.mxu0 %v1988_v32 }
 0x4d5   : > { %v796_v37 = vpop.permute.xlu0 %795  ;;  %v961_v38 = vmul.f32 %v2125_v33, %v2117_v23  ;;  %v1325_v23 = vsub.s32 4, %v2441_v20  ;;  %1990 = vmatprep.subr.bf16.mxu0 %v2247_v11  ;;  %v1422_v33 = vld [vmem:[%s2415_s12 + $0x28] sm:$0xff] }
 0x4d6   : > { %1877 = vmatpush3.msra.mxu1 %v796_v37  ;;  %v1421_v37 = vld [vmem:[%s2415_s12 + $0x20] sm:$0xff] }
 0x4d7   : > { %1879 = vmatmul.mubr.msk.f32.vlgmr.msra.gmra.mrb[6].mxu1 %vm540_vm3, %v794_v35  ;;  %1886 = vmatprep.subr.mxu1 %v2249_v14  ;;  %v1326_v27 = vrot.slane %v2445_v22, %v1325_v23  ;;  %v1420_v35 = vld [vmem:[%s2415_s12 + $0x18] sm:$0xff] }
 0x4d8   : > { %1887 = vmatpush3.msra.mxu1 %v963_v36  ;;  %1888 = vmatprep.mubr.msk.f32.mxu1 %vm2248_vm2, %v2249_v14  ;;  %v1991_v36 = vpack.c.bf16 %v1420_v35, %v1419_v34 }
 0x4d9   : > { %1896 = vmatprep.subr.mxu1 %v2249_v14 }
 0x4da   : > { %1992 = vmatpush3.bf16.msra.mxu0 %v1991_v36 }
 0x4db   : > { %1889 = vmatmul.mubr.msk.f32.vlgmr.msra.gmra.mrb[8].mxu1 %vm540_vm3, %v961_v38  ;;  %1993 = vmatprep.subr.bf16.mxu0 %v2247_v11  ;;  %v1994_v38 = vpack.c.bf16 %v1422_v33, %v1421_v37 }
 0x4dc   : > { %v2127_v40 = vpop.eup %2126  ;;  %1897 = vmatpush3.msra.mxu1 %v1130_v39  ;;  %1898 = vmatprep.mubr.msk.f32.mxu1 %vm2248_vm2, %v2249_v14  ;;  %v1423_v39 = vld [vmem:[%s2415_s12 + $0x30] sm:$0xff] }
 0x4dd   : > { %v1128_v41 = vmul.f32 %v2127_v40, %v2119_v25  ;;  %1975 = vmatprep.subr.bf16.mxu1 %v2247_v11  ;;  %v1424_v40 = vld [vmem:[%s2415_s12 + $0x38] sm:$0xff] }
 0x4de   : > { %1995 = vmatpush3.bf16.msra.mxu0 %v1994_v38 }
 0x4df   : > { %1899 = vmatmul.mubr.msk.f32.vlgmr.msra.gmra.mrb[10].mxu1 %vm540_vm3, %v1128_v41  ;;  %1996 = vmatprep.subr.bf16.mxu0 %v2247_v11  ;;  %v1997_v41 = vpack.c.bf16 %v1424_v40, %v1423_v39 }
 0x4e0   : > { %1909 = vmatprep.mubr.msk.f32.mxu1 %vm2248_vm2, %v2249_v14  ;;  %1977 = vmatpush3.bf16.msra.mxu1 %v1976_v44  ;;  %v2000_v44 = vpack.c.bf16 %v1426_v43, %v1425_v42 }
 0x4e1   : > { %1978 = vmatprep.subr.bf16.mxu1 %v2247_v11 }
 0x4e2   : > { %1998 = vmatpush3.bf16.msra.mxu0 %v1997_v41 }
 0x4e3   : > { %1999 = vmatprep.subr.bf16.mxu0 %v2247_v11 }
 0x4e4   : > { %1980 = vmatpush3.bf16.msra.mxu1 %v1979_v49  ;;  %v1430_v49 = vld [vmem:[%s2415_s12 + $0x68] sm:$0xff] }
 0x4e5   : > { %1981 = vmatprep.subr.bf16.mxu1 %v2247_v11 }
 0x4e6   : > { %2001 = vmatpush3.bf16.msra.mxu0 %v2000_v44 }
 0x4e7   : > { %2002 = vmatprep.subr.bf16.mxu0 %v2247_v11 }
 0x5a1   : > { %v700_v45 = vpop.f32.mrb[4].mxu1 }
 0x5a2   : > { %v1870_v46 = vpop.f32.mrb[5].mxu1 }
 0x5a3   : > { %v1428_v46 = vld [vmem:[%s2415_s12 + $0x58] sm:$0xff] }
 0x5aa   : > { %v867_v50 = vpop.f32.mrb[6].mxu1 }
 0x5ab   : > { %1206 = vrot.lane.b32.xlu0 %v867_v50, %s2262_s24  ;;  %v1880_v51 = vpop.f32.mrb[7].mxu1  ;;  %v2006_v50 = vpack.c.bf16 %v1430_v49, %v1429_v48 }
 0x5ac   : > { %v1431_v51 = vld [vmem:[%s2415_s12 + $0x70] sm:$0xff] }
 0x5ae   : > { %v1034_v52 = vpop.f32.mrb[8].mxu1 }
 0x5af   : > { %1210 = vrot.lane.b32.xlu1 %v1034_v52, %s2263_s28  ;;  %v1890_v53 = vpop.f32.mrb[9].mxu1  ;;  %v1432_v52 = vld [vmem:[%s2415_s12 + $0x78] sm:$0xff] }
 0x5b0   : > { %v2009_v53 = vpack.c.bf16 %v1432_v52, %v1431_v51 }
 0x5b2   : > { %v1201_v54 = vpop.f32.mrb[10].mxu1 }
 0x5b3   : > { %1214 = vrot.lane.b32.xlu0 %v1201_v54, %s2264_s18  ;;  %v1900_v55 = vpop.f32.mrb[11].mxu1  ;;  %v1334_v54 = vsub.s32 5, %v2441_v20 }
 0x5b5   : > { %v1335_v55 = vrot.slane %v2445_v22, %v1334_v54 }
 0x61d   : > { %v1207_v56 = vpop.permute.xlu0 %1206 }
 0x61e   : > { %v1217_v58 = vsel %vm540_vm3, %v700_v45, %v1207_v56  ;;  %v1427_v45 = vld [vmem:[%s2415_s12 + $0x50] sm:$0xff] }
 0x61f   : > { %v2003_v47 = vpack.c.bf16 %v1428_v46, %v1427_v45 }
 0x621   : > { %v1211_v57 = vpop.permute.xlu1 %1210  ;;  %2004 = vmatpush3.bf16.msra.mxu0 %v2003_v47 }
 0x622   : > { %v1219_v59 = vsel %vm1218_vm5, %v1217_v58, %v1211_v57  ;;  %2005 = vmatprep.subr.bf16.mxu0 %v2247_v11 }
 0x625   : > { %v1215_v60 = vpop.permute.xlu0 %1214  ;;  %2007 = vmatpush3.bf16.msra.mxu0 %v2006_v50 }
 0x626   : > { %v1221_v61 = vsel %vm1220_vm6, %v1219_v59, %v1215_v60  ;;  %2008 = vmatprep.subr.bf16.mxu0 %v2247_v11 }
 0x627   : > { %1910 = vmatmul.mubr.msk.f32.vlgmr.msra.gmra.mrb[12].mxu1 %vm431_vm1, %v1221_v61 }
 0x628   : > { %1920 = vmatprep.mubr.msk.f32.mxu1 %vm2248_vm2, %v2249_v14 }
 0x629   : > { %2010 = vmatpush3.bf16.msra.mxu0 %v2009_v53 }
 0x62a   : > { %2011 = vmatprep.subr.bf16.mxu0 (!%p1788_p6), %v2265_v15 }
 0x6fa   : > { %v1295_v0 = vpop.f32.mrb[12].mxu1 }
 0x6fb   : > { %v1299_v2 = vadd.f32 %v1295_v0, %v2427_v1  ;;  %v1911_v3 = vpop.f32.mrb[13].mxu1  ;;  %v1982_v1 = vpack.c.bf16 %v1329_v12, %v1328_v10 }
 0x6fd   : > { %v2527_v4 = vadd.f32 %v1303_v63, %v1299_v2  ;;  %1983 = vmatpush3.bf16.msra.mxu1 %v1982_v1  ;;  %v1538_v1 = vld [vmem:[%s2653_s8 + $0x8] sm:$0xff] (!%p1788_p6) }
 0x6fe   : > { %1984 = vmatprep.subr.bf16.mxu1 %v2247_v11  ;;  %v1506_v11 = vsub.s32 6, %v2441_v20 }
 0x6ff   : > { %v1305_v5 = vsel %vm431_vm1, %v2527_v4, 0.0 }
 0x700   : > { %1306 = vadd.xlane.f32.xlu1 %v1305_v5  ;;  %v1507_v2 = vrot.slane %v2445_v22, %v1506_v11 }
 0x701   : > { %1986 = vmatpush3.bf16.msra.mxu1 %v1985_v16 }
 0x78d   : > { %v1307_v6 = vpop.xlane.xlu1 %1306 }
 0x78e   : > { %v1308_v7 = vmul.f32 0.03125, %v1307_v6 }
 0x790   : > { %v1309_v14 = vsub.f32 %v2527_v4, %v1308_v7 }
 0x792   : > { %v1310_v8 = vmul.f32 %v1309_v14, %v1309_v14 }
 0x794   : > { %v1311_v9 = vsel %vm431_vm1, %v1310_v8, 0.0 }
 0x795   : > { %1312 = vadd.xlane.f32.xlu0 %v1311_v9 }
 0x822   : > { %v1313_v17 = vpop.xlane.xlu0 %1312 }
 0x823   : > { %v1314_v18 = vmul.f32 0.03125, %v1313_v17  ;;  %v1540_v17 = vld [vmem:[%s2653_s8 + $0x18] sm:$0xff] (!%p1788_p6) }
 0x825   : > { %v1315_v19 = vadd.f32 1e-05, %v1314_v18  ;;  %v2267_v18 = vmov (!%p1788_p6), 0.0  }
 0x827   : > { %2128 = vrsqrt.f32 %v1315_v19  ;;  %v2015_v19 = vpack.c.bf16 (!%p1788_p6), %v1540_v17, %v1539_v13 }
 0x831   : > { %v2129_v25 = vpop.eup %2128 }
 0x832   : > { %v1317_v26 = vmul.f32 %v2129_v25, %v1309_v14  ;;  %v1514_v25 = vld [vmem:[%s2652_s7] sm:$0x3] (!%p1788_p6) }
 0x834   : > { %v1322_v28 = vmul.f32 %v1321_v24, %v1317_v26 }
 0x836   : > { %v1327_v29 = vadd.f32 %v1326_v27, %v1322_v28  ;;  %v1534_v28 = vrot.slane (!%p1788_p6), %v1514_v25, 1 }
 0x838   : > { %1921 = vmatmul.mubr.msk.f32.vlgmr.msra.gmra.mrb[14].mxu1 %vm431_vm1, %v1327_v29 }
 0x90b   : > { %v1405_v56 = vpop.f32.mrb[14].mxu1 }
 0x90c   : > { %v1406_v57 = vadd.f32 %v1405_v56, %v1335_v55  ;;  %v1922_v58 = vpop.f32.mrb[15].mxu1 }
 0x90e   : > { %v1787_v59 = vmul.f32 -1.702, %v1406_v57 }
 0x910   : > { %v1411_v60 = vmul.f32 1.442695, %v1787_v59 }
 0x912   : > { %2130 = vpow2.f32 %v1411_v60 }
 0x91c   : > { %v2131_v61 = vpop.eup %2130 }
 0x91d   : > { %v1413_v62 = vadd.f32 1.0, %v2131_v61 }
 0x91f   : > { %2132 = vrcp.f32 %v1413_v62 }
 0x929   : > { %v2133_v63 = vpop.eup %2132 }
 0x92a   : > { %v1416_v0 = vmul.f32 %v2133_v63, %v1406_v57 }
 0x92c   : > { %1956 = vmatmul.mubr.f32.vlgmr.msra.gmra.mrb[6].mxu0 %v1416_v0 }
 0x92d   : > { %1966 = vmatprep.mubr.msk.f32.mxu0 (!%p1788_p6), %vm2266_vm8, %v2267_v18 }
 0x9fe   : > { %1513 = sbr.rel (%p1788_p6) target bundleno = 3098 (0xc1a), region = 60 }
 0x9ff   : > { %v1499_v3 = vpop.f32.mrb[6].mxu0 }
 0xa00   : > { %v1503_v5 = vadd.f32 %v1499_v3, %v2527_v4  ;;  %v1957_v6 = vpop.f32.mrb[7].mxu0  ;;  %v1537_v4 = vld [vmem:[%s2653_s8] sm:$0xff] (!%p1788_p6) }
 0xa01   : > { %v2012_v16 = vpack.c.bf16 (!%p1788_p6), %v1538_v1, %v1537_v4 }
 0xa02   : > { %v1508_v7 = vadd.f32 %v1507_v2, %v1503_v5 }
 0xa03   : > { %2013 = vmatpush3.bf16.msra.mxu0 (!%p1788_p6), %v2012_v16 }
 0xa04   : > { %1509 = vst.msk [vmem:[#allocation2] sm:$0xff] %vm431_vm1, %v1508_v7  ;;  %2014 = vmatprep.subr.bf16.mxu0 (!%p1788_p6), %v2265_v15 }
 0xa07   : > { %2016 = vmatpush3.bf16.msra.mxu0 %v2015_v19 }
 0xa0b   : > { %v1517_v14 = vld [vmem:[%s1516_s29] sm:$0x1] }
 0xa0c   : > { %v1519_v8 = vsel %vm1518_vm7, %v1517_v14, 0.0 }
 0xa0d   : > { %1520 = vadd.xlane.f32.xlu0 %v1519_v8 }
 0xa9a   : > { %v1521_v20 = vpop.xlane.xlu0 %1520 }
 0xa9b   : > { %v1522_v9 = vmul.f32 0.03125, %v1521_v20 }
 0xa9d   : > { %v1523_v22 = vsub.f32 %v1517_v14, %v1522_v9 }
 0xa9f   : > { %v1524_v10 = vmul.f32 %v1523_v22, %v1523_v22 }
 0xaa1   : > { %v1525_v12 = vsel %vm1518_vm7, %v1524_v10, 0.0 }
 0xaa2   : > { %1526 = vadd.xlane.f32.xlu0 %v1525_v12 }
 0xb2f   : > { %v1527_v21 = vpop.xlane.xlu0 %1526 }
 0xb30   : > { %v1528_v23 = vmul.f32 0.03125, %v1527_v21 }
 0xb32   : > { %v1529_v24 = vadd.f32 1e-05, %v1528_v23 }
 0xb34   : > { %2134 = vrsqrt.f32 %v1529_v24 }
 0xb3e   : > { %v2135_v26 = vpop.eup %2134 }
 0xb3f   : > { %v1531_v27 = vmul.f32 %v2135_v26, %v1523_v22 }
 0xb41   : > { %v1532_v29 = vmul.f32 %v1531_v27, %v1514_v25 }
 0xb43   : > { %v1536_v30 = vadd.f32 %v1534_v28, %v1532_v29 }
 0xb45   : > { %1967 = vmatmul.mubr.msk.f32.vlgmr.msra.gmra.mrb[0].mxu0 %vm431_vm1, %v1536_v30 }
 0xc18   : > { %v1610_v31 = vpop.f32.mrb[0].mxu0 }
 0xc19   : > { %1615 = vst.msk [vmem:[%s2424_s19] sm:$0x1] %vm1614_vm9, %v1610_v31  ;;  %v1968_v32 = vpop.f32.mrb[1].mxu0 }
 0xc1a PF: > { %s1790_s10 = sshll.u32 %s2232_s17, 4  ;;  %s1629_s28 = sshll.u32 %s2424_s19, 4  ;;  %s1630_s28 = int_to_ptr.vmem [resolvable:$true] %s1629_s28 }
 0xc1b   : > { %s2595_s24 = scalar_lea.hbm %s2654_s9, %s1790_s10  ;;  %s2675_s18 = sand.u32 1, %s2220_s15  }
 0xc1c   : > { %s1617_s26 = scalar_lea.sflag [#allocation6], %s2675_s18  ;;  %s2148_s29 = scalar_lea.vmem %s1630_s28, 16 }
 0xc1d   : > { %p2149_p7 = scmp.ne.s32.totalorder %s1630_s28, %s2148_s29  ;;  %s2268_s12 = smov [#allocation5]  }
 0xc1e   : > { %s2152_s14 = sshll.u32 %s2268_s12, 4  ;;  %s2153_s14 = int_to_ptr.vmem [resolvable:$false] %s2152_s14 }
 0xc1f   : > { %p2150_p9 = pnand %p2149_p7, %p2371_p8  ;;  %s2154_s0 = scalar_lea.vmem %s2153_s14, 32 }
 0xc20   : > { %p2155_p11 = scmp.lt.s32.totalorder %s1630_s28, %s2153_s14  ;;  %p2156_p12 = scmp.lt.s32.totalorder %s2154_s0, %s2148_s29 }
 0xc21   : > { %p2151_p10 = pneg %p2150_p9 }
 0xc22   : > { %p2157_p13 = por %p2156_p12, %p2155_p11 }
 0xc24   : > { %p2158_p1 = pnand %p2157_p13, %p2151_p10 }
 0xc26   : > { %2161 = shalt.err (!%p2158_p1)
}
 0xc27   : > { %s2162_s17 = scalar_lea.hbm %s2595_s24, 16  ;;  %s2166_s20 = scalar_lea.hbm %s2654_s9, 48 }
 0xc28   : > { %p2163_p2 = scmp.ne.s32.totalorder %s2595_s24, %s2162_s17  ;;  %p2167_p5 = scmp.lt.u32.totalorder %s2595_s24, %s2654_s9 }
 0xc29   : > { %p2168_p6 = scmp.lt.u32.totalorder %s2166_s20, %s2162_s17  ;;  %p2170_p9 = scmp.lt.u32.totalorder %s2162_s17, %s2595_s24 }
 0xc2a   : > { %p2164_p3 = pnand %p2163_p2, %p2371_p8 }
 0xc2b   : > { %p2169_p7 = por %p2168_p6, %p2167_p5 }
 0xc2c   : > { %p2165_p4 = pneg %p2164_p3 }
 0xc2d   : > { %p2171_p10 = por %p2170_p9, %p2169_p7 }
 0xc2f   : > { %p2172_p11 = pnand %p2171_p10, %p2165_p4 }
 0xc31   : > { %2175 = shalt.err (!%p2172_p11)
}
 0xc32   : > { %2017 = dma.vmem_to_hbm [thread:$0]  (%p2371_p8), %s1630_s28, 16, %s2595_s24, %s1617_s26  }
 0xc33 PF: > { %s2676_s11 = sld [smem:[#allocation13_spill]]  ;;  %s2677_s22 = sld [smem:[#allocation9_spill]] }
 0xc39   : > { %p2023_p12 = scmp.ge.s32.totalorder %s2676_s11, 2  ;;  %s1641_s10 = sand.u32 1, %s2677_s22  }
 0xc3a   : > { %s1642_s13 = scalar_lea.sflag [#allocation6], %s1641_s10 }
 0xc3b   : > { %p2020_p13 = pnand %p2023_p12, %p2381_p0 }
 0xc3d   : > { %2211 = dma.done.wait (!%p2020_p13), %s1642_s13, 16  }
 0xc3e   : > { %2213 = vsyncadd (!%p2020_p13), %s1642_s13, 4294967280  ;;  %s28_s20 = sadd.s32 1, %s2676_s11   ;;  %s2679_s21 = sld [smem:[#allocation10_spill]] }
 0xc3f   : > { %p25_p1 = scmp.ge.s32.totalorder %s28_s20, 8   ;;  %s2680_s0 = sld [smem:[#allocation17_spill]] }
 0xc40   : > { %s2681_s16 = sld [smem:[#allocation11_spill]]  ;;  %s2682_s17 = sld [smem:[#allocation12_spill]] }
 0xc41   : > { %s2683_s18 = sld [smem:[#allocation14_spill]]  ;;  %s2684_s19 = sld [smem:[#allocation15_spill]] }
 0xc42   : > { %s2685_s14 = smov %s2220_s15  ;;  %27 = sbr.rel (!%p25_p1) target bundleno = 20 (0x14), region = 111 }
 0xc44   : > { %s2686_s15 = smov %s2679_s21 }
 0xc49   :  { %1646 = vsyncpa [#allocation6], 1 }
 0xc4a   :  { %1648 = vsyncpa [#allocation6 + $0x1], 1 }

</bundles_post_ra>
